<compile_context>
chip_gen: v5e
topology: v5e:2x2
jax: 0.10.0
libtpu: 0.0.40
codegen_flags: <defaults>
</compile_context>

<pallas_src>
import math

import numpy as np

import jax
import jax.numpy as jnp
from jax.experimental import pallas as pl
from jax.experimental.pallas import tpu as pltpu


def _round_up(x, m):
    return ((x + m - 1) // m) * m


def _pick_tile_d(d_pad, target):
    """Largest multiple of 128 that divides d_pad and is <= target."""
    target = max(128, (target // 128) * 128)
    best = 128
    t = 128
    while t <= min(target, d_pad):
        if d_pad % t == 0:
            best = t
        t += 128
    return best


def _fused_kernel(x_ref, w_ref, b_ref, o_ref, xk_ref):
    """Aligned-C path (C % 128 == 0): one K=3C MXU matmul per (batch, D-tile).

    x_ref : (1, L, C)   un-padded input, full sequence & channels
    w_ref : (3*C, Dt)   fused conv taps, rows ordered [tap0 | tap1 | tap2]
    b_ref : (1, Dt)     bias (f32)
    o_ref : (1, L, Dt)
    xk_ref: (L, 3*C)    scratch (compute dtype), built once per batch
    """
    L = x_ref.shape[1]

    @pl.when(pl.program_id(1) == 0)
    def _():
        xc = x_ref[0]                                   # (L, C), compute dtype
        x_prev = pltpu.roll(xc, shift=1, axis=0)        # x_prev[l] == x[l-1] (tap 0)
        x_next = pltpu.roll(xc, shift=L - 1, axis=0)    # x_next[l] == x[l+1] (tap 2)
        xk_ref[...] = jnp.concatenate([x_prev, xc, x_next], axis=-1)

    acc = jnp.dot(xk_ref[...], w_ref[...], preferred_element_type=jnp.float32)
    o_ref[0] = (acc + b_ref[...]).astype(o_ref.dtype)


def _split_kernel(x_ref, w_ref, b_ref, o_ref, xk_ref):
    """Unaligned-C path (small c_in): three small-K dots per (batch, D-tile).

    x_ref : (1, L, C)
    w_ref : (3, C, Dt)
    b_ref : (1, Dt)     bias (f32)
    o_ref : (1, L, Dt)
    xk_ref: (3, L, C)   scratch (compute dtype), built once per batch
    """
    L = x_ref.shape[1]

    @pl.when(pl.program_id(1) == 0)
    def _():
        xc = x_ref[0]
        xk_ref[0] = pltpu.roll(xc, shift=1, axis=0)      # x[l-1]  (tap 0)
        xk_ref[1] = xc                                   # x[l]    (tap 1)
        xk_ref[2] = pltpu.roll(xc, shift=L - 1, axis=0)  # x[l+1]  (tap 2)

    acc = jnp.dot(xk_ref[0], w_ref[0], preferred_element_type=jnp.float32)
    acc = acc + jnp.dot(xk_ref[1], w_ref[1], preferred_element_type=jnp.float32)
    acc = acc + jnp.dot(xk_ref[2], w_ref[2], preferred_element_type=jnp.float32)
    o_ref[0] = (acc + b_ref[...]).astype(o_ref.dtype)


def token_embedding(x, weight, bias, *, tile_d=256, compute_dtype=None, out_dtype=None):
    """Circular Conv1d(k=3, pad=1) token embedding.

    x: (B, L, C); weight: (3, C, D) with weight[k, c, d] == W_torch[d, c, k]; bias: (D,).
    Returns (B, L, D), equal to torch's tokenConv(x.permute(0,2,1)).transpose(1,2).
    compute_dtype=jnp.bfloat16 halves HBM traffic on v6e/v7x (f32 accumulation kept).
    """
    B, L, C = x.shape
    K, Cw, D = weight.shape
    assert K == 3 and Cw == C, "expected weight of shape (3, C_in, d_model)"

    cdt = np.dtype(compute_dtype) if compute_dtype is not None else np.dtype(x.dtype)
    odt = np.dtype(out_dtype) if out_dtype is not None else cdt

    x_c = x.astype(cdt)
    w_c = weight.astype(cdt)
    b_f32 = bias.astype(jnp.float32)      # bias add stays f32 (v5e has no bf16 VPU path)

    # Lane-dense output: pad D up to a multiple of 128 (no-op for real model widths).
    D_pad = _round_up(D, 128)
    if D_pad != D:
        w_c = jnp.pad(w_c, ((0, 0), (0, 0), (0, D_pad - D)))
        b_f32 = jnp.pad(b_f32, (0, D_pad - D))
    bias2d = b_f32.reshape(1, D_pad)

    td = _pick_tile_d(D_pad, tile_d)
    n_d = D_pad // td
    grid = (B, n_d)                        # D innermost -> x block reused across D tiles

    fused = (C % 128 == 0)
    if fused:
        w_in = w_c.reshape(3 * C, D_pad)   # rows ordered [tap0 | tap1 | tap2]
        w_spec = pl.BlockSpec((3 * C, td), lambda b, j: (0, j))
        scratch = pltpu.VMEM((L, 3 * C), cdt)
        kernel = _fused_kernel
    else:
        w_in = w_c                         # (3, C, D_pad) -- clean leading-axis indexing
        w_spec = pl.BlockSpec((3, C, td), lambda b, j: (0, 0, j))
        scratch = pltpu.VMEM((3, L, C), cdt)
        kernel = _split_kernel

    cost = pl.CostEstimate(
        flops=2 * B * L * 3 * C * D_pad,
        transcendentals=0,
        bytes_accessed=(
            x_c.size * cdt.itemsize
            + w_in.size * cdt.itemsize
            + bias2d.size * 4
            + B * L * D_pad * np.dtype(odt).itemsize
        ),
    )

    out = pl.pallas_call(
        kernel,
        out_shape=jax.ShapeDtypeStruct((B, L, D_pad), odt),
        grid_spec=pltpu.PrefetchScalarGridSpec(
            num_scalar_prefetch=0,
            grid=grid,
            in_specs=[
                pl.BlockSpec((1, L, C), lambda b, j: (b, 0, 0)),
                w_spec,
                pl.BlockSpec((1, td), lambda b, j: (0, j)),
            ],
            out_specs=pl.BlockSpec((1, L, td), lambda b, j: (b, 0, j)),
            scratch_shapes=[scratch],
        ),
        compiler_params=pltpu.CompilerParams(
            # D axis must be "arbitrary": the per-batch scratch is filled at j == 0.
            dimension_semantics=("parallel", "arbitrary"),
            vmem_limit_bytes=48 * 1024 * 1024,   # fits v7x's 64 MiB VMEM with headroom
        ),
        cost_estimate=cost,
    )(x_c, w_in, bias2d)

    if D_pad != D:
        out = out[:, :, :D]
    return out
    # TODO(synk): for very long sequences where L*C alone is large, also tile L
    # (requires passing the 2 wrap rows separately since roll needs the full L block).


def reference(x, weight, bias):
    """Pure-JAX reference of the circular conv in channels-last layout."""
    x_pad = jnp.concatenate([x[:, -1:, :], x, x[:, :1, :]], axis=1)
    L = x.shape[1]
    out = bias[None, None, :]
    for k in range(3):
        out = out + jnp.einsum("blc,cd->bld", x_pad[:, k:k + L, :], weight[k])
    return out


def _make_params(key, c_in, d_model, dtype=jnp.float32):
    kw, kb = jax.random.split(key)
    # kaiming_normal_(mode='fan_in', nonlinearity='leaky_relu', negative_slope=0.01)
    fan_in = c_in * 3
    gain = math.sqrt(2.0 / (1.0 + 0.01 ** 2))
    std = gain / math.sqrt(fan_in)
    weight = std * jax.random.normal(kw, (3, c_in, d_model), dtype=dtype)
    # default Conv1d bias init: U(-1/sqrt(fan_in), 1/sqrt(fan_in))
    bound = 1.0 / math.sqrt(fan_in)
    bias = jax.random.uniform(kb, (d_model,), minval=-bound, maxval=bound, dtype=dtype)
    return weight, bias


if __name__ == "__main__":
    key = jax.random.PRNGKey(0)
    k1, k2, k3 = jax.random.split(key, 3)

    # --- Case 1: module-consistent small shapes (unaligned-C / split path). ---
    B, L, C_IN, D_MODEL = 2, 8, 4, 32
    x = jax.random.normal(k1, (B, L, C_IN), dtype=jnp.float32)
    weight, bias = _make_params(k2, C_IN, D_MODEL)
    ref = reference(x, weight, bias)

    out = token_embedding(x, weight, bias)
    jax.block_until_ready(out)
    assert out.shape == (B, L, D_MODEL)
    assert jnp.allclose(out, ref, atol=1e-5, rtol=1e-5)

    # bf16 fast path (v6e/v7x bandwidth win; f32 MXU accumulation, bf16 output).
    out_bf16 = token_embedding(x, weight, bias, compute_dtype=jnp.bfloat16)
    jax.block_until_ready(out_bf16)
    assert out_bf16.dtype == jnp.bfloat16
    assert jnp.allclose(out_bf16.astype(jnp.float32), ref, atol=5e-2, rtol=5e-2)

    # --- Case 2: lane-aligned channels (fused K=3C path). ---
    C2, D2 = 128, 256
    x2 = jax.random.normal(k3, (B, L, C2), dtype=jnp.float32)
    weight2, bias2 = _make_params(k2, C2, D2)
    ref2 = reference(x2, weight2, bias2)

    out2 = token_embedding(x2, weight2, bias2)
    jax.block_until_ready(out2)
    assert out2.shape == (B, L, D2)
    assert jnp.allclose(out2, ref2, atol=1e-4, rtol=1e-4)

    print("KERNEL_OK")
</pallas_src>

<mosaic_0001>
module attributes {stable_mosaic.version = 11 : i64} {
  func.func @_split_kernel(%arg0: i32, %arg1: i32, %arg2: memref<1x8x4xf32, #tpu.memory_space<vmem>>, %arg3: memref<3x4x128xf32, #tpu.memory_space<vmem>>, %arg4: memref<1x128xf32, #tpu.memory_space<vmem>>, %arg5: memref<1x8x128xf32, #tpu.memory_space<vmem>>, %arg6: memref<3x8x4xf32, #tpu.memory_space<vmem>>) attributes {dimension_semantics = [#tpu.dimension_semantics<parallel>, #tpu.dimension_semantics<arbitrary>], iteration_bounds = array<i64: 2, 1>, scalar_prefetch = 0 : i64, scratch_operands = 1 : i64, tpu.core_type = #tpu.core_type<tc>, window_params = [{transform_indices = @transform_0, window_bounds = array<i64: 1, 8, 4>}, {transform_indices = @transform_1, window_bounds = array<i64: 3, 4, 128>}, {transform_indices = @transform_2, window_bounds = array<i64: 1, 128>}, {transform_indices = @transform_3, window_bounds = array<i64: 1, 8, 128>}]} {
    %c0_i32 = arith.constant 0 : i32
    %0 = arith.cmpi eq, %arg1, %c0_i32 : i32
    %1 = arith.extui %0 : i1 to i32
    %c0_i32_0 = arith.constant 0 : i32
    %2 = arith.cmpi ne, %1, %c0_i32_0 : i32
    scf.if %2 {
      %c0_23 = arith.constant 0 : index
      %c0_24 = arith.constant 0 : index
      %c0_25 = arith.constant 0 : index
      %26 = vector.load %arg2[%c0_23, %c0_24, %c0_25] : memref<1x8x4xf32, #tpu.memory_space<vmem>>, vector<1x8x4xf32>
      %27 = vector.shape_cast %26 : vector<1x8x4xf32> to vector<8x4xf32>
      %c1_i32 = arith.constant 1 : i32
      %28 = tpu.dynamic_rotate %27 by %c1_i32 dim 0 : vector<8x4xf32>, i32 -> vector<8x4xf32>
      %c0_26 = arith.constant 0 : index
      %c0_27 = arith.constant 0 : index
      %c0_28 = arith.constant 0 : index
      %29 = vector.load %arg6[%c0_26, %c0_27, %c0_28] : memref<3x8x4xf32, #tpu.memory_space<vmem>>, vector<1x8x4xf32>
      %30 = vector.shape_cast %29 : vector<1x8x4xf32> to vector<8x4xf32>
      %31 = vector.shape_cast %28 : vector<8x4xf32> to vector<1x8x4xf32>
      tpu.vector_store %arg6[%c0_26, %c0_27, %c0_28], %31 {strides = array<i32>} : memref<3x8x4xf32, #tpu.memory_space<vmem>>, vector<1x8x4xf32>,
      %c1_29 = arith.constant 1 : index
      %c0_30 = arith.constant 0 : index
      %c0_31 = arith.constant 0 : index
      %32 = vector.load %arg6[%c1_29, %c0_30, %c0_31] : memref<3x8x4xf32, #tpu.memory_space<vmem>>, vector<1x8x4xf32>
      %33 = vector.shape_cast %32 : vector<1x8x4xf32> to vector<8x4xf32>
      %34 = vector.shape_cast %27 : vector<8x4xf32> to vector<1x8x4xf32>
      tpu.vector_store %arg6[%c1_29, %c0_30, %c0_31], %34 {strides = array<i32>} : memref<3x8x4xf32, #tpu.memory_space<vmem>>, vector<1x8x4xf32>,
      %c7_i32 = arith.constant 7 : i32
      %35 = tpu.dynamic_rotate %27 by %c7_i32 dim 0 : vector<8x4xf32>, i32 -> vector<8x4xf32>
      %c2_32 = arith.constant 2 : index
      %c0_33 = arith.constant 0 : index
      %c0_34 = arith.constant 0 : index
      %36 = vector.load %arg6[%c2_32, %c0_33, %c0_34] : memref<3x8x4xf32, #tpu.memory_space<vmem>>, vector<1x8x4xf32>
      %37 = vector.shape_cast %36 : vector<1x8x4xf32> to vector<8x4xf32>
      %38 = vector.shape_cast %35 : vector<8x4xf32> to vector<1x8x4xf32>
      tpu.vector_store %arg6[%c2_32, %c0_33, %c0_34], %38 {strides = array<i32>} : memref<3x8x4xf32, #tpu.memory_space<vmem>>, vector<1x8x4xf32>,
    } else {
    }
    %c0 = arith.constant 0 : index
    %c0_1 = arith.constant 0 : index
    %c0_2 = arith.constant 0 : index
    %3 = vector.load %arg6[%c0, %c0_1, %c0_2] : memref<3x8x4xf32, #tpu.memory_space<vmem>>, vector<1x8x4xf32>
    %4 = vector.shape_cast %3 : vector<1x8x4xf32> to vector<8x4xf32>
    %c0_3 = arith.constant 0 : index
    %c0_4 = arith.constant 0 : index
    %c0_5 = arith.constant 0 : index
    %5 = vector.load %arg3[%c0_3, %c0_4, %c0_5] : memref<3x4x128xf32, #tpu.memory_space<vmem>>, vector<1x4x128xf32>
    %6 = vector.shape_cast %5 : vector<1x4x128xf32> to vector<4x128xf32>
    %cst = arith.constant dense<0.000000e+00> : vector<8x128xf32>
    %7 = tpu.matmul %4, %6, %cst {dimension_numbers = #tpu.dot_dimension_numbers<[1], [0], [0], [1], [0, 0, 1, 1], [], []>} : vector<8x4xf32>, vector<4x128xf32>, vector<8x128xf32> -> vector<8x128xf32>
    %c1 = arith.constant 1 : index
    %c0_6 = arith.constant 0 : index
    %c0_7 = arith.constant 0 : index
    %8 = vector.load %arg6[%c1, %c0_6, %c0_7] : memref<3x8x4xf32, #tpu.memory_space<vmem>>, vector<1x8x4xf32>
    %9 = vector.shape_cast %8 : vector<1x8x4xf32> to vector<8x4xf32>
    %c1_8 = arith.constant 1 : index
    %c0_9 = arith.constant 0 : index
    %c0_10 = arith.constant 0 : index
    %10 = vector.load %arg3[%c1_8, %c0_9, %c0_10] : memref<3x4x128xf32, #tpu.memory_space<vmem>>, vector<1x4x128xf32>
    %11 = vector.shape_cast %10 : vector<1x4x128xf32> to vector<4x128xf32>
    %cst_11 = arith.constant dense<0.000000e+00> : vector<8x128xf32>
    %12 = tpu.matmul %9, %11, %cst_11 {dimension_numbers = #tpu.dot_dimension_numbers<[1], [0], [0], [1], [0, 0, 1, 1], [], []>} : vector<8x4xf32>, vector<4x128xf32>, vector<8x128xf32> -> vector<8x128xf32>
    %13 = arith.addf %7, %12 : vector<8x128xf32>
    %c2 = arith.constant 2 : index
    %c0_12 = arith.constant 0 : index
    %c0_13 = arith.constant 0 : index
    %14 = vector.load %arg6[%c2, %c0_12, %c0_13] : memref<3x8x4xf32, #tpu.memory_space<vmem>>, vector<1x8x4xf32>
    %15 = vector.shape_cast %14 : vector<1x8x4xf32> to vector<8x4xf32>
    %c2_14 = arith.constant 2 : index
    %c0_15 = arith.constant 0 : index
    %c0_16 = arith.constant 0 : index
    %16 = vector.load %arg3[%c2_14, %c0_15, %c0_16] : memref<3x4x128xf32, #tpu.memory_space<vmem>>, vector<1x4x128xf32>
    %17 = vector.shape_cast %16 : vector<1x4x128xf32> to vector<4x128xf32>
    %cst_17 = arith.constant dense<0.000000e+00> : vector<8x128xf32>
    %18 = tpu.matmul %15, %17, %cst_17 {dimension_numbers = #tpu.dot_dimension_numbers<[1], [0], [0], [1], [0, 0, 1, 1], [], []>} : vector<8x4xf32>, vector<4x128xf32>, vector<8x128xf32> -> vector<8x128xf32>
    %19 = arith.addf %13, %18 : vector<8x128xf32>
    %c0_18 = arith.constant 0 : index
    %c0_19 = arith.constant 0 : index
    %20 = vector.load %arg4[%c0_18, %c0_19] : memref<1x128xf32, #tpu.memory_space<vmem>>, vector<1x128xf32>
    %21 = vector.broadcast %20 : vector<1x128xf32> to vector<8x128xf32>
    %22 = arith.addf %19, %21 : vector<8x128xf32>
    %c0_20 = arith.constant 0 : index
    %c0_21 = arith.constant 0 : index
    %c0_22 = arith.constant 0 : index
    %23 = vector.load %arg5[%c0_20, %c0_21, %c0_22] : memref<1x8x128xf32, #tpu.memory_space<vmem>>, vector<1x8x128xf32>
    %24 = vector.shape_cast %23 : vector<1x8x128xf32> to vector<8x128xf32>
    %25 = vector.shape_cast %22 : vector<8x128xf32> to vector<1x8x128xf32>
    tpu.vector_store %arg5[%c0_20, %c0_21, %c0_22], %25 {strides = array<i32>} : memref<1x8x128xf32, #tpu.memory_space<vmem>>, vector<1x8x128xf32>,
    return
  }
  func.func @transform_0(%arg0: i32, %arg1: i32) -> (i32, i32, i32) {
    %c0_i32 = arith.constant 0 : i32
    %c0_i32_0 = arith.constant 0 : i32
    %c0_i32_1 = arith.constant 0 : i32
    return %arg0, %c0_i32, %c0_i32_0 : i32, i32, i32
  }
  func.func @transform_1(%arg0: i32, %arg1: i32) -> (i32, i32, i32) {
    %c0_i32 = arith.constant 0 : i32
    %c0_i32_0 = arith.constant 0 : i32
    %c0_i32_1 = arith.constant 0 : i32
    return %c0_i32, %c0_i32_0, %arg1 : i32, i32, i32
  }
  func.func @transform_2(%arg0: i32, %arg1: i32) -> (i32, i32) {
    %c0_i32 = arith.constant 0 : i32
    %c0_i32_0 = arith.constant 0 : i32
    return %c0_i32, %arg1 : i32, i32
  }
  func.func @transform_3(%arg0: i32, %arg1: i32) -> (i32, i32, i32) {
    %c0_i32 = arith.constant 0 : i32
    %c0_i32_0 = arith.constant 0 : i32
    return %arg0, %c0_i32, %arg1 : i32, i32, i32
  }
}

</mosaic_0001>

<bundles_post_ra>
// kernel: tpu_custom_call.1
= control target key start
LH: loop header
LB: loop body
LE: loop exit
PB: predicated region body
PF: predicated region fallthrough
CT: control target
= control target key end

     0   :  { %8 = vsyncpa [#allocation4], 0  ;;  %s719_s0 = inlined_call_operand.vmem [shape: f32[2,8,4], index: 0, kind: input, shape index: {}]   ;;  %s720_s1 = inlined_call_operand.vmem [shape: f32[3,4,128], index: 1, kind: input, shape index: {}]   ;;  %s721_s2 = inlined_call_operand.vmem [shape: f32[1,128], index: 2, kind: input, shape index: {}]   ;;  %s722_s3 = inlined_call_operand.hbm [shape: f32[2,8,128], index: 3, kind: output, shape index: {}]  }
   0x1   :  { %10 = vsyncpa [#allocation4 + $0x1], 0  ;;  %s610_s12 = smov 0   ;;  %s612_s13 = smov 0  }
   0x2   :  { %s614_s14 = smov 0   ;;  %s616_s15 = smov 0  }
   0x3   :  { %s618_s16 = smov 0   ;;  %s620_s17 = smov 0  }
   0x4 LB: > { %s433_s18 = sadd.s32 4294967295, %s588_s17   ;;  %s434_s19 = sadd.s32 4294967294, %s588_s17   ;;  %s588_s17 = sphi %s620_s17, %s16_s17   ;;  %s584_s16 = sphi %s618_s16, %s729_s16   ;;  %s580_s15 = sphi %s616_s15, %s728_s15   ;;  %s576_s14 = sphi %s614_s14, %s727_s14   ;;  %s572_s13 = sphi %s612_s13, %s726_s13   ;;  %s568_s12 = sphi %s610_s12, %s725_s12  }
   0x5   : > { %s28_s20 = sadd.s32 1, %s584_s16  ;;  %s115_s21 = sadd.s32 1, %s576_s14 }
   0x6   : > { %p30_p0 = scmp.ge.s32.totalorder %s28_s20, 2  ;;  %p125_p1 = scmp.ne.s32.totalorder %s576_s14, %s572_s13 }
   0x7   : > { %p126_p2 = scmp.eq.s32.totalorder %s433_s18, 1  ;;  %p131_p3 = scmp.ne.s32.totalorder %s572_s13, %s568_s12 }
   0x8   : > { %s731_s20 = smov (%p30_p0, %s28_s20), 0  ;;  %p132_p5 = scmp.eq.s32.totalorder %s434_s19, 1 }
   0x9   : > { %p650_p4 = por %p126_p2, %p125_p1  ;;  %s110_s23 = ssub.s32 %s584_s16, %s731_s20 }
   0xa   : > { %p439_p6 = scmp.ge.s32.totalorder %s588_s17, 1  ;;  %p113_p7 = scmp.eq.s32.totalorder %s110_s23, 0 }
   0xb   : > { %p657_p8 = por %p132_p5, %p131_p3  ;;  %p170_p9 = scmp.lt.s32.totalorder %s588_s17, 3 }
   0xc   : > { %s663_s25 = scalar_select %p113_p7, %s576_s14, %s115_s21  }
   0xd   : > { %p171_p10 = pnand %p439_p6, %p170_p9 }
   0xe   : > { %p200_p11 = scmp.lt.s32.totalorder (!%p171_p10), %s580_s15, 1  ;;  %s197_s10 = sand.u32 (!%p171_p10), 1, %s572_s13  }
   0xf   : > { %174 = sbr.rel (%p171_p10) target bundleno = 175 (0xaf), region = 32  ;;  %s440_s11 = sshll.u32 (!%p171_p10), %s197_s10, 3 }
  0x10   : > { %s451_s18 = sshll.u32 (!%p171_p10), %s580_s15, 3  ;;  %s199_s28 = scalar_lea.vmem (!%p171_p10), [#allocation3], %s440_s11 }
  0x11   : > { %s333_s23 = scalar_lea.hbm (!%p171_p10), %s722_s3, %s451_s18  ;;  %s335_s29 = sshll.u32 (!%p171_p10), %s199_s28, 4  ;;  %s336_s29 = int_to_ptr.vmem [resolvable:$true] %s335_s29 }
  0x12   : > { %s337_s30 = sshll.u32 (!%p171_p10), %s333_s23, 4  ;;  %s530_s8 = scalar_lea.hbm (!%p171_p10), %s722_s3, 16  ;;  %s338_s30 = int_to_ptr.hbm [resolvable:$true] %s337_s30 }
  0x13   : > { %s524_s4 = sshra.s32 (!%p171_p10), %s338_s30, 4  ;;  %s525_s4 = int_to_ptr.hbm [resolvable:$true] %s524_s4 }
  0x14   : > { %vm234_vm0 = vcmask 1043456   ;;  %v447_v0 = vld [vmem:[%s720_s1 + $0x8] sm:$0xf]  ;;  %v442_v1 = vld [vmem:[%s720_s1 + $0x4] sm:$0xf]  ;;  %s201_s5 = scalar_select %p200_p11, %s580_s15, 1 }
  0x15   : > { %448 = vmatpush.msk.msra.mxu2 %vm234_vm0, %v447_v0  ;;  %v225_v2 = vld [vmem:[%s720_s1] sm:$0xf]  ;;  %443 = vmatpush.msk.msra.mxu0 %vm234_vm0, %v442_v1  ;;  %vm217_vm1 = vcmask 31744   ;;  %s322_s15 = scalar_lea.sflag [#allocation4], %s197_s10  ;;  %p531_p1 = scmp.lt.s32.totalorder %s525_s4, %s722_s3 }
  0x16   : > { %445 = vmatpush.msk.msra.mxu1 %vm234_vm0, %v225_v2  ;;  %s441_s6 = sshll.u32 %s201_s5, 3  ;;  %v509_v12 = vld [vmem:[%s721_s2] ss:$0 sm:$0xff]  ;;  %s526_s5 = scalar_lea.hbm %s525_s4, 8 }
  0x17   : > { %s203_s9 = scalar_lea.vmem %s719_s0, %s441_s6  ;;  %p527_p12 = scmp.ne.s32.totalorder %s525_s4, %s526_s5 }
  0x18   : > { %v215_v3 = vld [vmem:[%s203_s9] sm:$0xff]  ;;  %p532_p2 = scmp.lt.s32.totalorder %s530_s8, %s526_s5 }
  0x19   : > { %v216_v4 = vrot.slane %v215_v3, 7  ;;  %220 = vst.msk [vmem:[#allocation2 + $0x8] sm:$0xff] %vm217_vm1, %v215_v3  ;;  %v221_v5 = vrot.slane %v215_v3, 1  ;;  %p528_p13 = pnand %p527_p12, %p650_p4 }
  0x1a   : > { %p533_p3 = por %p532_p2, %p531_p1 }
  0x1b   : > { %218 = vst.msk [vmem:[#allocation2] sm:$0xff] %vm217_vm1, %v216_v4  ;;  %p529_p0 = pneg %p528_p13 }
  0x1c   : > { %223 = vst.msk [vmem:[#allocation2 + $0x10] sm:$0xff] %vm217_vm1, %v221_v5 }
  0x1d   : > { %p534_p5 = pnand %p533_p3, %p529_p0 }
  0x20   : > { %v227_v6 = vld [vmem:[#allocation2 + $0x8] sm:$0xff] }
  0x21   : > { %444 = vmatmul.msk.f32.vlgmr.msra.gmra.mxu0 %vm217_vm1, %v227_v6 }
  0x22   : > { %v224_v7 = vld [vmem:[#allocation2] sm:$0xff] }
  0x23   : > { %v285_v8 = vld [vmem:[#allocation2 + $0x10] sm:$0xff]  ;;  %446 = vmatmul.msk.f32.vlgmr.msra.gmra.mxu1 %vm217_vm1, %v224_v7 }
  0x24   : > { %449 = vmatmul.msk.f32.vlgmr.msra.gmra.mxu2 %vm217_vm1, %v285_v8 }
  0x9e   : > { %v255_v9 = vpop.f32.mrf.mxu0 }
  0xa0   : > { %v281_v10 = vpop.f32.mrf.mxu1 }
  0xa1   : > { %v282_v11 = vadd.f32 %v281_v10, %v255_v9 }
  0xa7   : > { %v311_v13 = vpop.f32.mrf.mxu2 }
  0xa8   : > { %v314_v14 = vadd.f32 %v311_v13, %v282_v11 }
  0xaa   : > { %v319_v15 = vadd.f32 %v509_v12, %v314_v14 }
  0xac   : > { %320 = vst [vmem:[%s199_s28] sm:$0xff] %v319_v15 }
  0xad   : > { %537 = shalt.err (!%p534_p5)
}
  0xae   : > { %454 = dma.vmem_to_hbm [thread:$0]  (%p650_p4), %s336_s29, 128, %s338_s30, %s322_s15  }
  0xaf PF: > { %p460_p6 = scmp.ge.s32.totalorder %s588_s17, 2  ;;  %s349_s10 = sand.u32 1, %s568_s12  }
  0xb0   : > { %s350_s18 = scalar_lea.sflag [#allocation4], %s349_s10 }
  0xb1   : > { %p457_p7 = pnand %p460_p6, %p657_p8 }
  0xb3   : > { %p458_p9 = pneg %p457_p7 }
  0xb5   : > { %563 = dma.done.wait (%p458_p9), %s350_s18, 128  }
  0xb6   : > { %565 = vsyncadd (%p458_p9), %s350_s18, 4294967168  ;;  %s16_s17 = sadd.s32 1, %s588_s17   ;;  %s725_s12 = smov %s572_s13 }
  0xb7   : > { %p13_p10 = scmp.ge.s32.totalorder %s16_s17, 4   ;;  %s726_s13 = smov %s576_s14 }
  0xb8   : > { %s727_s14 = smov %s663_s25  ;;  %s728_s15 = smov %s584_s16 }
  0xb9   : > { %s729_s16 = smov %s731_s20  ;;  %15 = sbr.rel (!%p13_p10) target bundleno = 4 (0x4), region = 83 }
  0xbe   :  { %356 = vsyncpa [#allocation4], 1 }
  0xbf   :  { %358 = vsyncpa [#allocation4 + $0x1], 1 }

</bundles_post_ra>
